<compile_context>
chip_gen: v7x
topology: tpu7x:2x2x1
jax: 0.10.0
libtpu: 0.0.40
codegen_flags: <defaults>
</compile_context>

<pallas_src>
import math
import jax
import jax.numpy as jnp
from jax.experimental import pallas as pl
from jax.experimental.pallas import tpu as pltpu


def _round_up(x, m):
    return ((x + m - 1) // m) * m


def _choose_row_tile(n_pad):
    """Row-tile size (multiple of 8) s.t. one adj strip (TM x N_pad x 4B) stays
    <= ~2 MiB, so double-buffering fits comfortably inside the default scoped
    VMEM limit on every TPU generation (v5e 16 MiB, v6e/v7x 32 MiB)."""
    budget_bytes = 2 * 1024 * 1024
    tm = budget_bytes // (n_pad * 4)
    tm = max(8, min(tm, n_pad, 512))
    if tm >= 128:
        tm = (tm // 128) * 128          # MXU-friendly multiples of 128
    else:
        tm = (tm // 8) * 8              # at least sublane-aligned
    if tm >= n_pad:
        return n_pad
    return tm


def _gcn_kernel(x_ref, adj_ref, w_ref, b_ref, o_ref, support_ref):
    # Grid: (batch b, row tile i).
    # Compute support = x @ w once per batch element, cache it in VMEM scratch.
    @pl.when(pl.program_id(1) == 0)
    def _():
        support_ref[...] = jnp.dot(
            x_ref[0], w_ref[...], preferred_element_type=jnp.float32)

    adj_rows = adj_ref[0]                                       # (TM, N_pad)
    out = jnp.dot(adj_rows, support_ref[...],
                  preferred_element_type=jnp.float32)           # (TM, Fout_pad)
    o_ref[0] = (out + b_ref[...]).astype(o_ref.dtype)


def graph_convolution(input_, adj, weight, bias=None):
    """Pallas GCN layer forward.

    input_: (B, N, Fin) float32
    adj:    (B, N, N)   float32
    weight: (Fin, Fout) float32
    bias:   (Fout,) float32 or None
    returns (B, N, Fout) float32
    """
    B, N, Fin = input_.shape
    Fout = weight.shape[1]
    dtype = input_.dtype

    # Lane-dense output: pad Fout up to a multiple of 128.
    fout_pad = _round_up(Fout, 128)
    # Sublane-friendly node count, then make it divisible by the row tile.
    n_pad = _round_up(N, 8)
    tm = _choose_row_tile(n_pad)
    if tm < n_pad:
        n_pad = _round_up(N, tm)
    num_row_tiles = n_pad // tm

    # Pad parameters (zero columns contribute nothing; sliced off at the end).
    w_p = jnp.zeros((Fin, fout_pad), dtype=dtype).at[:, :Fout].set(weight)
    if bias is None:
        b_p = jnp.zeros((1, fout_pad), dtype=dtype)
    else:
        b_p = jnp.zeros((1, fout_pad), dtype=dtype).at[0, :Fout].set(bias)

    # Pad node dimension with zeros (zero x rows / adj rows+cols are inert).
    x_p, adj_p = input_, adj
    if n_pad != N:
        x_p = jnp.pad(input_, ((0, 0), (0, n_pad - N), (0, 0)))
        adj_p = jnp.pad(adj, ((0, 0), (0, n_pad - N), (0, n_pad - N)))

    out = pl.pallas_call(
        _gcn_kernel,
        out_shape=jax.ShapeDtypeStruct((B, n_pad, fout_pad), dtype),
        grid_spec=pltpu.PrefetchScalarGridSpec(
            num_scalar_prefetch=0,
            grid=(B, num_row_tiles),
            in_specs=[
                # x: whole (padded) node block per batch; only re-DMA'd when b changes.
                pl.BlockSpec((1, n_pad, Fin), lambda b, i: (b, 0, 0)),
                # adj: one (TM, N_pad) row strip per step.
                pl.BlockSpec((1, tm, n_pad), lambda b, i: (b, i, 0)),
                # weight / bias: resident (same block every step).
                pl.BlockSpec((Fin, fout_pad), lambda b, i: (0, 0)),
                pl.BlockSpec((1, fout_pad), lambda b, i: (0, 0)),
            ],
            out_specs=pl.BlockSpec((1, tm, fout_pad), lambda b, i: (b, i, 0)),
            scratch_shapes=[pltpu.VMEM((n_pad, fout_pad), jnp.float32)],
        ),
        compiler_params=pltpu.CompilerParams(
            # Batch axis is independent (megacore-shardable); the row-tile axis
            # depends on the per-batch support scratch -> "arbitrary".
            dimension_semantics=("parallel", "arbitrary")),
    )(x_p, adj_p, w_p, b_p)

    return out[:, :N, :Fout]


if __name__ == "__main__":
    key = jax.random.PRNGKey(0)

    def make_inputs(key, B, N, Fin, Fout):
        k_x, k_adj, k_w, k_b = jax.random.split(key, 4)
        x = jax.random.normal(k_x, (B, N, Fin), dtype=jnp.float32)
        adj_raw = jax.random.uniform(k_adj, (B, N, N), dtype=jnp.float32)
        adj = (adj_raw + jnp.swapaxes(adj_raw, 1, 2)) * 0.5
        # Mirror reset_parameters(): uniform(-stdv, stdv), stdv = 1/sqrt(Fout).
        stdv = 1.0 / math.sqrt(Fout)
        w = jax.random.uniform(k_w, (Fin, Fout), minval=-stdv, maxval=stdv,
                               dtype=jnp.float32)
        b = jax.random.uniform(k_b, (Fout,), minval=-stdv, maxval=stdv,
                               dtype=jnp.float32)
        return x, adj, w, b

    # Case 1: module-consistent small shapes (batch=2, nodes=8, Fin=16, Fout=32).
    k1, k2 = jax.random.split(key)
    x, adj, w, b = make_inputs(k1, B=2, N=8, Fin=16, Fout=32)
    out = jax.block_until_ready(graph_convolution(x, adj, w, b))
    ref = jnp.einsum("bnm,bmf->bnf", adj, x @ w) + b
    assert out.shape == (2, 8, 32)
    assert jnp.allclose(out, ref, atol=1e-5, rtol=1e-5)

    # Case 2: unaligned N / Fout (exercises padding + slicing) and bias=None.
    x2, adj2, w2, _ = make_inputs(k2, B=2, N=10, Fin=16, Fout=40)
    out2 = jax.block_until_ready(graph_convolution(x2, adj2, w2, bias=None))
    ref2 = jnp.einsum("bnm,bmf->bnf", adj2, x2 @ w2)
    assert out2.shape == (2, 10, 40)
    assert jnp.allclose(out2, ref2, atol=1e-5, rtol=1e-5)

    print("KERNEL_OK")
</pallas_src>

<mosaic_0001>
module attributes {stable_mosaic.version = 11 : i64} {
  func.func @_gcn_kernel(%arg0: i32, %arg1: i32, %arg2: memref<1x8x16xf32, #tpu.memory_space<vmem>>, %arg3: memref<1x8x8xf32, #tpu.memory_space<vmem>>, %arg4: memref<16x128xf32, #tpu.memory_space<vmem>>, %arg5: memref<1x128xf32, #tpu.memory_space<vmem>>, %arg6: memref<1x8x128xf32, #tpu.memory_space<vmem>>, %arg7: memref<8x128xf32, #tpu.memory_space<vmem>>) attributes {dimension_semantics = [#tpu.dimension_semantics<parallel>, #tpu.dimension_semantics<arbitrary>], iteration_bounds = array<i64: 2, 1>, scalar_prefetch = 0 : i64, scratch_operands = 1 : i64, tpu.core_type = #tpu.core_type<tc>, window_params = [{transform_indices = @transform_0, window_bounds = array<i64: 1, 8, 16>}, {transform_indices = @transform_1, window_bounds = array<i64: 1, 8, 8>}, {pipeline_mode = #tpu.pipeline_mode<synchronous>, transform_indices = @transform_2, window_bounds = array<i64: 16, 128>}, {pipeline_mode = #tpu.pipeline_mode<synchronous>, transform_indices = @transform_3, window_bounds = array<i64: 1, 128>}, {transform_indices = @transform_4, window_bounds = array<i64: 1, 8, 128>}]} {
    %c0_i32 = arith.constant 0 : i32
    %0 = arith.cmpi eq, %arg1, %c0_i32 : i32
    %1 = arith.extui %0 : i1 to i32
    %c0_i32_0 = arith.constant 0 : i32
    %2 = arith.cmpi ne, %1, %c0_i32_0 : i32
    scf.if %2 {
      %c0_10 = arith.constant 0 : index
      %c0_11 = arith.constant 0 : index
      %c0_12 = arith.constant 0 : index
      %13 = vector.load %arg2[%c0_10, %c0_11, %c0_12] : memref<1x8x16xf32, #tpu.memory_space<vmem>>, vector<1x8x16xf32>
      %14 = vector.shape_cast %13 : vector<1x8x16xf32> to vector<8x16xf32>
      %c0_13 = arith.constant 0 : index
      %c0_14 = arith.constant 0 : index
      %15 = vector.load %arg4[%c0_13, %c0_14] : memref<16x128xf32, #tpu.memory_space<vmem>>, vector<16x128xf32>
      %cst_15 = arith.constant dense<0.000000e+00> : vector<8x128xf32>
      %16 = tpu.matmul %14, %15, %cst_15 {dimension_numbers = #tpu.dot_dimension_numbers<[1], [0], [0], [1], [0, 0, 1, 1], [], []>} : vector<8x16xf32>, vector<16x128xf32>, vector<8x128xf32> -> vector<8x128xf32>
      %c0_16 = arith.constant 0 : index
      %c0_17 = arith.constant 0 : index
      %17 = vector.load %arg7[%c0_16, %c0_17] : memref<8x128xf32, #tpu.memory_space<vmem>>, vector<8x128xf32>
      tpu.vector_store %arg7[%c0_16, %c0_17], %16 {strides = array<i32>} : memref<8x128xf32, #tpu.memory_space<vmem>>, vector<8x128xf32>,
    } else {
    }
    %c0 = arith.constant 0 : index
    %c0_1 = arith.constant 0 : index
    %c0_2 = arith.constant 0 : index
    %3 = vector.load %arg3[%c0, %c0_1, %c0_2] : memref<1x8x8xf32, #tpu.memory_space<vmem>>, vector<1x8x8xf32>
    %4 = vector.shape_cast %3 : vector<1x8x8xf32> to vector<8x8xf32>
    %c0_3 = arith.constant 0 : index
    %c0_4 = arith.constant 0 : index
    %5 = vector.load %arg7[%c0_3, %c0_4] : memref<8x128xf32, #tpu.memory_space<vmem>>, vector<8x128xf32>
    %cst = arith.constant dense<0.000000e+00> : vector<8x128xf32>
    %6 = tpu.matmul %4, %5, %cst {dimension_numbers = #tpu.dot_dimension_numbers<[1], [0], [0], [1], [0, 0, 1, 1], [], []>} : vector<8x8xf32>, vector<8x128xf32>, vector<8x128xf32> -> vector<8x128xf32>
    %c0_5 = arith.constant 0 : index
    %c0_6 = arith.constant 0 : index
    %7 = vector.load %arg5[%c0_5, %c0_6] : memref<1x128xf32, #tpu.memory_space<vmem>>, vector<1x128xf32>
    %8 = vector.broadcast %7 : vector<1x128xf32> to vector<8x128xf32>
    %9 = arith.addf %6, %8 : vector<8x128xf32>
    %c0_7 = arith.constant 0 : index
    %c0_8 = arith.constant 0 : index
    %c0_9 = arith.constant 0 : index
    %10 = vector.load %arg6[%c0_7, %c0_8, %c0_9] : memref<1x8x128xf32, #tpu.memory_space<vmem>>, vector<1x8x128xf32>
    %11 = vector.shape_cast %10 : vector<1x8x128xf32> to vector<8x128xf32>
    %12 = vector.shape_cast %9 : vector<8x128xf32> to vector<1x8x128xf32>
    tpu.vector_store %arg6[%c0_7, %c0_8, %c0_9], %12 {strides = array<i32>} : memref<1x8x128xf32, #tpu.memory_space<vmem>>, vector<1x8x128xf32>,
    return
  }
  func.func @transform_0(%arg0: i32, %arg1: i32) -> (i32, i32, i32) {
    %c0_i32 = arith.constant 0 : i32
    %c0_i32_0 = arith.constant 0 : i32
    %c0_i32_1 = arith.constant 0 : i32
    return %arg0, %c0_i32, %c0_i32_0 : i32, i32, i32
  }
  func.func @transform_1(%arg0: i32, %arg1: i32) -> (i32, i32, i32) {
    %c0_i32 = arith.constant 0 : i32
    %c0_i32_0 = arith.constant 0 : i32
    return %arg0, %arg1, %c0_i32 : i32, i32, i32
  }
  func.func @transform_2(%arg0: i32, %arg1: i32) -> (i32, i32) {
    %c0_i32 = arith.constant 0 : i32
    %c0_i32_0 = arith.constant 0 : i32
    %c0_i32_1 = arith.constant 0 : i32
    return %c0_i32, %c0_i32_0 : i32, i32
  }
  func.func @transform_3(%arg0: i32, %arg1: i32) -> (i32, i32) {
    %c0_i32 = arith.constant 0 : i32
    %c0_i32_0 = arith.constant 0 : i32
    %c0_i32_1 = arith.constant 0 : i32
    return %c0_i32, %c0_i32_0 : i32, i32
  }
  func.func @transform_4(%arg0: i32, %arg1: i32) -> (i32, i32, i32) {
    %c0_i32 = arith.constant 0 : i32
    %c0_i32_0 = arith.constant 0 : i32
    return %arg0, %arg1, %c0_i32 : i32, i32, i32
  }
}

</mosaic_0001>

<bundles_post_ra>
// kernel: tpu_custom_call.1
= control target key start
LH: loop header
LB: loop body
LE: loop exit
PB: predicated region body
PF: predicated region fallthrough
CT: control target
= control target key end

     0   :  { %s1166_s0 = inlined_call_operand.hbm [shape: f32[2,8,16], index: 0, kind: input, shape index: {}]   ;;  %s1167_s1 = inlined_call_operand.hbm [shape: f32[2,8,8], index: 1, kind: input, shape index: {}]   ;;  %s1168_s2 = inlined_call_operand.hbm [shape: f32[16,128], index: 2, kind: input, shape index: {}]   ;;  %s1169_s3 = inlined_call_operand.vmem [shape: f32[1,128], index: 3, kind: input, shape index: {}]   ;;  %s1170_s4 = inlined_call_operand.hbm [shape: f32[2,8,128], index: 4, kind: output, shape index: {}]  }
   0x1   :  { %1177 = sst [smem:[#allocation16_spill]] %s1168_s2 }
   0x2   :  { %9 = vsyncpa [#allocation4], 0 }
   0x3   :  { %11 = vsyncpa [#allocation4 + $0x1], 0 }
   0x4   :  { %12 = vsyncpa [#allocation7], 0 }
   0x5   :  { %14 = vsyncpa [#allocation7 + $0x1], 0 }
   0x6   :  { %15 = vsyncpa [#allocation5], 0 }
   0x7   :  { %17 = vsyncpa [#allocation5 + $0x1], 0  ;;  %s912_s15 = smov 0   ;;  %s914_s16 = smov 0  }
   0x8   :  { %s916_s17 = smov 0   ;;  %s918_s18 = smov 0  }
   0x9   :  { %s920_s19 = smov 0   ;;  %s922_s20 = smov 0  }
   0xa LB: > { %1178 = sst [smem:[#allocation14_spill]] %s872_s19  ;;  %s943_s21 = sadd.s32 4294967295, %s876_s20   ;;  %s876_s20 = sphi %s922_s20, %s23_s20   ;;  %s872_s19 = sphi %s920_s19, %s1197_s19   ;;  %s868_s18 = sphi %s918_s18, %s1196_s18   ;;  %s864_s17 = sphi %s916_s17, %s1200_s17   ;;  %s860_s16 = sphi %s914_s16, %s1199_s16   ;;  %s856_s15 = sphi %s912_s15, %s1198_s15  }
   0xb   : > { %s575_s22 = sadd.s32 4294967294, %s876_s20   ;;  %p55_p0 = scmp.ne.s32.totalorder %s860_s16, %s856_s15 }
   0xc   : > { %p1171_p1 = scmp.eq.s32.totalorder %s943_s21, 0  ;;  %p157_p3 = scmp.eq.s32.totalorder %s575_s22, 1 }
   0xd   : > { %p576_p5 = scmp.ge.s32.totalorder %s876_s20, 1  ;;  %p164_p7 = scmp.lt.s32.totalorder %s876_s20, 3 }
   0xe   : > { %p952_p4 = por %p1171_p1, %p55_p0  ;;  %p957_p6 = por %p157_p3, %p55_p0 }
   0xf   : > { %p962_p8 = pnand %p576_p5, %p164_p7  ;;  %s878_s26 = smov [#allocation8]  }
  0x10   : > { %s1179_s23 = scalar_select %p952_p4, 1, 0 }
  0x11   : > { %s1180_s24 = scalar_select %p957_p6, 1, 0 }
  0x12   : > { %s1181_s25 = scalar_select %p962_p8, 1, 0 }
  0x13   : > { %s176_s27 = sshll.u32 %s878_s26, 4  ;;  %p625_p9 = pneg %p962_p8  ;;  %s177_s27 = int_to_ptr.vmem [resolvable:$true] %s176_s27 }
  0x14   : > { %s35_s29 = sadd.s32 1, %s872_s19  ;;  %s1183_s2 = sld [smem:[#allocation16_spill]] }
  0x15   : > { %p971_p11 = pnand %p625_p9, %p1171_p1 }
  0x17   : > { %p700_p13 = pneg %p971_p11 }
  0x1a   : > { %s698_s6 = scalar_lea.hbm %s1183_s2, 256 }
  0x1b   : > { %p699_p12 = scmp.ne.s32.totalorder %s1183_s2, %s698_s6  ;;  %p705_p5 = scmp.lt.u32.totalorder %s698_s6, %s1183_s2 }
  0x1d   : > { %p701_p0 = pnand %p700_p13, %p699_p12 }
  0x1f   : > { %p702_p3 = pneg %p701_p0 }
  0x21   : > { %p707_p7 = pnand %p705_p5, %p702_p3 }
  0x23   : > { %710 = shalt.err (!%p707_p7)
}
  0x24   : > { %s711_s11 = scalar_lea.vmem %s177_s27, 256  ;;  %p719_p2 = scmp.lt.s32.totalorder %s177_s27, %s177_s27 }
  0x25   : > { %p712_p9 = scmp.ne.s32.totalorder %s177_s27, %s711_s11  ;;  %p720_p6 = scmp.lt.s32.totalorder %s711_s11, %s711_s11 }
  0x27   : > { %p714_p10 = pnand %p712_p9, %p700_p13  ;;  %p721_p4 = por %p720_p6, %p719_p2 }
  0x29   : > { %p715_p1 = pneg %p714_p10 }
  0x2b   : > { %p722_p8 = pnand %p721_p4, %p715_p1 }
  0x2d   : > { %725 = shalt.err (!%p722_p8)
}
  0x2e   : > { %s879_s12 = smov 128   ;;  %s880_s13 = smov 8  }
  0x2f   : > { %628 = dma.hbm_to_vmem [thread:$0]  (!%p971_p11), %s1183_s2, 256, %s177_s27, [#allocation7], %s879_s12, %s879_s12, %s880_s13  }
  0x30   : > { %p37_p1 = scmp.ge.s32.totalorder %s35_s29, 2  ;;  %s42_s26 = sadd.s32 1, %s864_s17 }
  0x31   : > { %p49_p2 = scmp.ne.s32.totalorder %s864_s17, %s860_s16  ;;  %p50_p4 = scmp.eq.s32.totalorder %s876_s20, 0 }
  0x32   : > { %s1202_s29 = smov (%p37_p1, %s35_s29), 0  ;;  %p1186_p8 = scmp.eq.s32.totalorder %s943_s21, 1 }
  0x33   : > { %1184 = sst [smem:[#allocation15_spill]] %s1202_s29  ;;  %p998_p6 = por %p50_p4, %p49_p2 }
  0x34   : > { %p1004_p10 = por %p1186_p8, %p49_p2  ;;  %s39_s5 = ssub.s32 %s872_s19, %s1202_s29 }
  0x35   : > { %p641_p11 = scmp.lt.s32.totalorder %s876_s20, 2  ;;  %p40_p12 = scmp.eq.s32.totalorder %s39_s5, 0 }
  0x36   : > { %s1187_s28 = scalar_select %p1004_p10, 1, 0 }
  0x37   : > { %s193_s27 = sand.u32 1, %s864_s17   ;;  %s580_s8 = sshll.u32 %s872_s19, 7 }
  0x38   : > { %s1012_s6 = sshll.u32 %s193_s27, 3  ;;  %s1021_s11 = scalar_lea.hbm %s1166_s0, %s580_s8 }
  0x39   : > { %s1015_s7 = scalar_select %p40_p12, %s864_s17, %s42_s26  }
  0x3a   : > { %s197_s12 = scalar_lea.vmem [#allocation3], %s1012_s6  ;;  %p1028_p13 = pnand %p641_p11, %p998_p6 }
  0x3b   : > { %s204_s13 = sshll.u32 %s197_s12, 4  ;;  %s1035_s5 = scalar_lea.hbm %s1167_s1, %s580_s8  ;;  %s1024_s13 = int_to_ptr.vmem [resolvable:$true] %s204_s13 }
  0x3c   : > { %s211_s9 = sand.u32 1, %s876_s20   ;;  %s194_s10 = scalar_lea.sflag [#allocation4], %s193_s27 }
  0x3d   : > { %s726_s2 = scalar_lea.hbm %s1021_s11, 128  ;;  %p728_p3 = pneg %p1028_p13 }
  0x3e   : > { %p727_p0 = scmp.ne.s32.totalorder %s1021_s11, %s726_s2  ;;  %s731_s29 = scalar_lea.hbm %s1166_s0, 256 }
  0x3f   : > { %p732_p9 = scmp.lt.u32.totalorder %s1021_s11, %s1166_s0  ;;  %p733_p1 = scmp.lt.u32.totalorder %s731_s29, %s726_s2 }
  0x40   : > { %p729_p5 = pnand %p728_p3, %p727_p0  ;;  %p735_p4 = scmp.lt.u32.totalorder %s726_s2, %s1021_s11 }
  0x41   : > { %p734_p2 = por %p733_p1, %p732_p9 }
  0x42   : > { %p730_p7 = pneg %p729_p5 }
  0x43   : > { %p736_p6 = por %p735_p4, %p734_p2 }
  0x45   : > { %p737_p8 = pnand %p736_p6, %p730_p7 }
  0x47   : > { %740 = shalt.err (!%p737_p8)
}
  0x48   : > { %s741_s27 = scalar_lea.vmem %s1024_s13, 128  ;;  %s881_s8 = smov [#allocation3]  }
  0x49   : > { %p742_p11 = scmp.ne.s32.totalorder %s1024_s13, %s741_s27  ;;  %s746_s26 = sshll.u32 %s881_s8, 4  ;;  %s747_s26 = int_to_ptr.vmem [resolvable:$false] %s746_s26 }
  0x4a   : > { %s748_s19 = scalar_lea.vmem %s747_s26, 256  ;;  %p749_p5 = scmp.lt.s32.totalorder %s1024_s13, %s747_s26 }
  0x4b   : > { %p744_p12 = pnand %p742_p11, %p728_p3  ;;  %p750_p9 = scmp.lt.s32.totalorder %s748_s19, %s741_s27 }
  0x4d   : > { %p745_p0 = pneg %p744_p12  ;;  %p751_p1 = por %p750_p9, %p749_p5 }
  0x4f   : > { %p752_p2 = pnand %p751_p1, %p745_p0 }
  0x51   : > { %755 = shalt.err (!%p752_p2)
}
  0x52   : > { %632 = dma.hbm_to_vmem [thread:$0]  (!%p1028_p13), %s1021_s11, 128, %s1024_s13, %s194_s10  }
  0x53   : > { %s215_s2 = scalar_lea.vmem [#allocation6], %s1012_s6  ;;  %s212_s30 = scalar_lea.sflag [#allocation7], %s211_s9 }
  0x54   : > { %s223_s29 = sshll.u32 %s215_s2, 4  ;;  %s756_s12 = scalar_lea.hbm %s1035_s5, 128  ;;  %s224_s29 = int_to_ptr.vmem [resolvable:$true] %s223_s29 }
  0x55   : > { %p757_p7 = scmp.ne.s32.totalorder %s1035_s5, %s756_s12  ;;  %s761_s8 = scalar_lea.hbm %s1167_s1, 256 }
  0x56   : > { %p762_p8 = scmp.lt.u32.totalorder %s1035_s5, %s1167_s1  ;;  %p763_p11 = scmp.lt.u32.totalorder %s761_s8, %s756_s12 }
  0x57   : > { %p759_p4 = pnand %p757_p7, %p728_p3  ;;  %p765_p0 = scmp.lt.u32.totalorder %s756_s12, %s1035_s5 }
  0x58   : > { %p764_p12 = por %p763_p11, %p762_p8 }
  0x59   : > { %p760_p6 = pneg %p759_p4 }
  0x5a   : > { %p766_p5 = por %p765_p0, %p764_p12 }
  0x5c   : > { %p767_p9 = pnand %p766_p5, %p760_p6 }
  0x5e   : > { %770 = shalt.err (!%p767_p9)
}
  0x5f   : > { %s771_s6 = scalar_lea.vmem %s224_s29, 128  ;;  %s882_s11 = smov [#allocation6]  }
  0x60   : > { %p772_p1 = scmp.ne.s32.totalorder %s224_s29, %s771_s6  ;;  %s776_s13 = sshll.u32 %s882_s11, 4  ;;  %s777_s13 = int_to_ptr.vmem [resolvable:$false] %s776_s13 }
  0x61   : > { %s778_s9 = scalar_lea.vmem %s777_s13, 256  ;;  %p779_p4 = scmp.lt.s32.totalorder %s224_s29, %s777_s13 }
  0x62   : > { %p774_p2 = pnand %p772_p1, %p728_p3  ;;  %p780_p10 = scmp.lt.s32.totalorder %s778_s9, %s771_s6 }
  0x64   : > { %p775_p7 = pneg %p774_p2  ;;  %p781_p8 = por %p780_p10, %p779_p4 }
  0x66   : > { %p782_p11 = pnand %p781_p8, %p775_p7 }
  0x68   : > { %785 = shalt.err (!%p782_p11)
}
  0x69   : > { %635 = dma.hbm_to_vmem [thread:$0]  (!%p1028_p13), %s1035_s5, 128, %s224_s29, %s212_s30  }
  0x6a   : > { %p1189_p6 = scmp.ne.s32.totalorder %s1181_s25, 0 }
  0x6b   : > { %s1088_s10 = sand.u32 (!%p1189_p6), 1, %s860_s16   ;;  %p1190_p10 = scmp.ne.s32.totalorder (!%p1189_p6), %s1179_s23, 0 }
  0x6c   : > { %232 = sbr.rel (%p1189_p6) target bundleno = 569 (0x239), region = 36  ;;  %s1091_s2 = sshll.u32 (!%p1189_p6), %s1088_s10, 3 }
  0x6d   : > { %s235_s12 = scalar_lea.sflag (!%p1189_p6), [#allocation4], %s1088_s10  ;;  %s238_s22 = scalar_lea.vmem (!%p1189_p6), [#allocation3], %s1091_s2 }
  0x73   : > { %839 = dma.done.wait (%p1190_p10), %s235_s12, 128  }
  0x74   : > { %841 = vsyncadd (%p1190_p10), %s235_s12, 4294967168  ;;  %s243_s25 = sand.u32 1, %s943_s21   ;;  %s247_s5 = scalar_lea.vmem [#allocation6], %s1091_s2 }
  0x75   : > { %s244_s14 = scalar_lea.sflag [#allocation7], %s243_s25 }
  0x76   : > { %843 = dma.done.wait (%p1190_p10), %s244_s14, 128  }
  0x77   : > { %845 = vsyncadd (%p1190_p10), %s244_s14, 4294967168  ;;  %p1191_p13 = scmp.eq.s32.totalorder %s943_s21, 0 }
  0x79   : > { %847 = dma.done.wait (%p1191_p13), [#allocation7], 256   ;;  %p1192_p3 = pmov %p1191_p13 }
  0x7a   : > { %v883_v0 = vmov 0.0|0.0   ;;  %vm884_vm0 = vmmov 0   ;;  %v885_v1 = vmov 0.0   ;;  %v286_v2 = vld [vmem:[#allocation8] sm:$0xff]  ;;  %v287_v3 = vld [vmem:[#allocation8 + $0x8] sm:$0xff]  ;;  %vm288_vm1 = vcmask 130048  }
  0x7b   : > { %849 = vsyncadd (%p1192_p3), [#allocation7], 4294967040  ;;  %612 = vmatprep.subr.bf16.mxu0 %v883_v0  ;;  %604 = vmatprep.mubr.msk.f32.mxu0 %vm884_vm0, %v885_v1  ;;  %v613_v4 = vpack.c.bf16 %v287_v3, %v286_v2  ;;  %v285_v5 = vld [vmem:[%s238_s22] sm:$0xff]  ;;  %v363_v6 = vld [vmem:[%s247_s5] sm:$0xff]  ;;  %vm372_vm2 = vcmask 64512   ;;  %s592_s29 = sshll.u32 %s868_s18, 7 }
  0x7c   : > { %607 = vmatprep.subr.mxu1 %v885_v1  ;;  %609 = vmatprep.mubr.msk.f32.mxu1 %vm884_vm0, %v885_v1  ;;  %v589_v9 = vld [vmem:[%s1169_s3] ss:$0 sm:$0xff]  ;;  %s280_s30 = scalar_lea.vmem [#allocation9], %s1091_s2  ;;  %s1117_s19 = scalar_lea.hbm %s1170_s4, %s592_s29 }
  0x7d   : > { %614 = vmatpush3.bf16.msra.mxu0 %v613_v4  ;;  %s462_s27 = sshll.u32 %s280_s30, 4  ;;  %s448_s6 = scalar_lea.sflag [#allocation5], %s1088_s10  ;;  %s1119_s27 = int_to_ptr.vmem [resolvable:$true] %s462_s27 }
  0x7e   : > { %s786_s11 = scalar_lea.vmem %s1119_s27, 128  ;;  %p1193_p0 = scmp.ne.s32.totalorder %s1187_s28, 0 }
  0x7f   : > { %p787_p12 = scmp.ne.s32.totalorder %s1119_s27, %s786_s11  ;;  %s886_s18 = smov [#allocation9]  }
  0x80   : > { %605 = vmatmul.mubr.msk.f32.vlgmr.msra.gmra.mrb[0].mxu0 %vm288_vm1, %v285_v5  ;;  %s790_s13 = sshll.u32 %s886_s18, 4  ;;  %s791_s13 = int_to_ptr.vmem [resolvable:$false] %s790_s13 }
  0x81   : > { %p788_p5 = pnand %p787_p12, %p1193_p0  ;;  %s792_s9 = scalar_lea.vmem %s791_s13, 256 }
  0x82   : > { %p793_p1 = scmp.lt.s32.totalorder %s1119_s27, %s791_s13  ;;  %p794_p2 = scmp.lt.s32.totalorder %s792_s9, %s786_s11 }
  0x83   : > { %p789_p9 = pneg %p788_p5 }
  0x84   : > { %p795_p7 = por %p794_p2, %p793_p1 }
  0x86   : > { %p796_p4 = pnand %p795_p7, %p789_p9 }
 0x153   : > { %v358_v7 = vpop.f32.mrb[0].mxu0 }
 0x154   : > { %v606_v8 = vpop.f32.mrb[1].mxu0  ;;  %608 = vmatpush3.msra.mxu1 %v358_v7 }
 0x155   : > { %610 = vmatmul.mubr.msk.f32.vlgmr.msra.gmra.mrb[0].mxu1 %vm372_vm2, %v363_v6 }
 0x228   : > { %v442_v10 = vpop.f32.mrb[0].mxu1 }
 0x229   : > { %v443_v11 = vadd.f32 %v589_v9, %v442_v10  ;;  %v611_v12 = vpop.f32.mrb[1].mxu1 }
 0x22b   : > { %446 = vst [vmem:[%s280_s30] sm:$0xff] %v443_v11 }
 0x22c   : > { %799 = shalt.err (!%p796_p4)
}
 0x22d   : > { %s800_s10 = scalar_lea.hbm %s1117_s19, 128  ;;  %s804_s22 = scalar_lea.hbm %s1170_s4, 256 }
 0x22e   : > { %p801_p8 = scmp.ne.s32.totalorder %s1117_s19, %s800_s10  ;;  %p805_p10 = scmp.lt.u32.totalorder %s1117_s19, %s1170_s4 }
 0x22f   : > { %p806_p13 = scmp.lt.u32.totalorder %s804_s22, %s800_s10  ;;  %p808_p12 = scmp.lt.u32.totalorder %s800_s10, %s1117_s19 }
 0x230   : > { %p802_p11 = pnand %p801_p8, %p1193_p0 }
 0x231   : > { %p807_p3 = por %p806_p13, %p805_p10 }
 0x232   : > { %p803_p6 = pneg %p802_p11 }
 0x233   : > { %p809_p5 = por %p808_p12, %p807_p3 }
 0x235   : > { %p810_p9 = pnand %p809_p5, %p803_p6 }
 0x237   : > { %813 = shalt.err (!%p810_p9)
}
 0x238   : > { %623 = dma.vmem_to_hbm [thread:$0]  (%p1193_p0), %s1119_s27, 128, %s1117_s19, %s448_s6  }
 0x239 PF: > { %s474_s5 = sand.u32 1, %s856_s15   ;;  %p1194_p1 = scmp.ne.s32.totalorder %s1180_s24, 0 }
 0x23a   : > { %p1195_p2 = scmp.ge.s32.totalorder %s876_s20, 2  ;;  %s475_s21 = scalar_lea.sflag [#allocation5], %s474_s5 }
 0x23c   : > { %p637_p7 = pnand %p1195_p2, %p1194_p1 }
 0x23e   : > { %851 = dma.done.wait (!%p637_p7), %s475_s21, 128  }
 0x23f   : > { %853 = vsyncadd (!%p637_p7), %s475_s21, 4294967168  ;;  %s23_s20 = sadd.s32 1, %s876_s20   ;;  %s1196_s18 = sld [smem:[#allocation14_spill]] }
 0x240   : > { %p20_p4 = scmp.ge.s32.totalorder %s23_s20, 4   ;;  %s1197_s19 = sld [smem:[#allocation15_spill]] }
 0x241   : > { %s1198_s15 = smov %s860_s16  ;;  %s1199_s16 = smov %s864_s17 }
 0x242   : > { %s1200_s17 = smov %s1015_s7  ;;  %22 = sbr.rel (!%p20_p4) target bundleno = 10 (0xa), region = 102 }
 0x249   :  { %480 = vsyncpa [#allocation4], 1 }
 0x24a   :  { %482 = vsyncpa [#allocation4 + $0x1], 1 }
 0x24b   :  { %483 = vsyncpa [#allocation7], 1 }
 0x24c   :  { %485 = vsyncpa [#allocation7 + $0x1], 1 }
 0x24d   :  { %486 = vsyncpa [#allocation5], 1 }
 0x24e   :  { %488 = vsyncpa [#allocation5 + $0x1], 1 }

</bundles_post_ra>
